<compile_context>
chip_gen: v6e
topology: v6e:2x2x1
jax: 0.10.0
libtpu: 0.0.40
codegen_flags: <defaults>
</compile_context>

<pallas_src>
import jax
import jax.numpy as jnp
from jax.experimental import pallas as pl
from jax.experimental.pallas import tpu as pltpu


def _mlp_kernel(x_ref,
                w1_ref, b1_ref,
                w2_ref, b2_ref,
                w3_ref, b3_ref,
                w4_ref, b4_ref,
                o_ref):
    """One (features, tile_m) column tile through the whole MLP."""
    x = x_ref[...]                      # (in_dim, tile_m), compute dtype
    cdt = x.dtype

    h = jnp.dot(w1_ref[...], x, preferred_element_type=jnp.float32) + b1_ref[...]
    h = jnp.maximum(h, 0.0)

    h = jnp.dot(w2_ref[...], h.astype(cdt),
                preferred_element_type=jnp.float32) + b2_ref[...]
    h = jnp.maximum(h, 0.0)

    h = jnp.dot(w3_ref[...], h.astype(cdt),
                preferred_element_type=jnp.float32) + b3_ref[...]
    h = jnp.maximum(h, 0.0)

    z = jnp.dot(w4_ref[...], h.astype(cdt),
                preferred_element_type=jnp.float32) + b4_ref[...]
    # sigmoid(z) = 1 / (1 + exp(-z)) : exp and approx-reciprocal both go to
    # the otherwise-idle EUP slot.
    y = pl.reciprocal(1.0 + jnp.exp(-z), approx=True)

    o_ref[...] = y.astype(o_ref.dtype)  # (out_dim, tile_m) — lane-dense store


def relational_mlp(x, params, *, tile_m=1024, compute_dtype=jnp.bfloat16):
    """x: (input_size, M) float32.  Returns (output_size, M) float32."""
    (w1, b1), (w2, b2), (w3, b3), (w4, b4) = params
    in_dim, M = x.shape
    hid = w1.shape[0]
    out_dim = w4.shape[0]

    # Ragged-M handling: pad the lane axis to a multiple of the tile.
    m128 = pl.cdiv(M, 128) * 128            # keep tiles a multiple of 128 lanes
    tm = min(tile_m, m128)
    m_pad = pl.cdiv(m128, tm) * tm
    if m_pad != M:
        x = jnp.pad(x, ((0, 0), (0, m_pad - M)))

    # Cast MXU operands once in the wrapper (halves x DMA bytes when bf16).
    xc = x.astype(compute_dtype)
    w1c, w2c, w3c, w4c = (w.astype(compute_dtype) for w in (w1, w2, w3, w4))
    b1f, b2f, b3f, b4f = (b.astype(jnp.float32) for b in (b1, b2, b3, b4))

    grid = (m_pad // tm,)
    full = lambda shape: pl.BlockSpec(shape, lambda i: (0, 0))  # resident in VMEM

    out = pl.pallas_call(
        _mlp_kernel,
        out_shape=jax.ShapeDtypeStruct((out_dim, m_pad), jnp.float32),
        grid_spec=pltpu.PrefetchScalarGridSpec(
            num_scalar_prefetch=0,
            grid=grid,
            in_specs=[
                pl.BlockSpec((in_dim, tm), lambda i: (0, i)),   # x column tile
                full((hid, in_dim)), full((hid, 1)),            # layer 1
                full((hid, hid)),    full((hid, 1)),            # layer 2
                full((hid, hid)),    full((hid, 1)),            # layer 3
                full((out_dim, hid)), full((out_dim, 1)),       # layer 4
            ],
            out_specs=pl.BlockSpec((out_dim, tm), lambda i: (0, i)),
        ),
        compiler_params=pltpu.CompilerParams(
            dimension_semantics=("parallel",)),
    )(xc, w1c, b1f, w2c, b2f, w3c, b3f, w4c, b4f)

    return out[:, :M]


def relational_model_forward(interaction_terms, params, *,
                             tile_m=1024, compute_dtype=jnp.bfloat16):
    """Mirrors RelationalModel.forward: list of (input_size, M_i) tensors in,
    list of (M_i, output_size) effects out.

    All terms are fused into a single pallas_call (one long lane axis), then
    split and transposed back to the PyTorch output layout.
    """
    sizes = [int(t.shape[1]) for t in interaction_terms]
    x_all = (interaction_terms[0] if len(interaction_terms) == 1
             else jnp.concatenate(interaction_terms, axis=1))
    y_all = relational_mlp(x_all, params, tile_m=tile_m,
                           compute_dtype=compute_dtype)   # (out_dim, sum(M_i))
    effects, off = [], 0
    for m in sizes:
        effects.append(jnp.transpose(y_all[:, off:off + m]))  # (M_i, out_dim)
        off += m
    return effects


def init_params(key, input_size, hidden_size, output_size):
    """PyTorch-like init.  Weights kept in nn.Linear layout (out, in);
    biases stored as (out, 1) for lane-broadcast inside the kernel."""
    dims = [(input_size, hidden_size),
            (hidden_size, hidden_size),
            (hidden_size, hidden_size),
            (hidden_size, output_size)]
    params = []
    for fan_in, fan_out in dims:
        key, kw, kb = jax.random.split(key, 3)
        bound = 1.0 / jnp.sqrt(fan_in)
        w = jax.random.uniform(kw, (fan_out, fan_in), jnp.float32, -bound, bound)
        b = jax.random.uniform(kb, (fan_out, 1), jnp.float32, -bound, bound)
        params.append((w, b))
    return params


def _reference_forward(interaction_terms, params):
    """Pure-JAX reference matching the PyTorch module exactly (f32)."""
    (w1, b1), (w2, b2), (w3, b3), (w4, b4) = params
    outs = []
    for t in interaction_terms:
        x = jnp.transpose(t)                       # (M, in)
        h = jax.nn.relu(x @ w1.T + b1[:, 0])
        h = jax.nn.relu(h @ w2.T + b2[:, 0])
        h = jax.nn.relu(h @ w3.T + b3[:, 0])
        outs.append(jax.nn.sigmoid(h @ w4.T + b4[:, 0]))
    return outs


if __name__ == "__main__":
    input_size, hidden_size, output_size = 6, 32, 3

    key = jax.random.PRNGKey(0)
    key, pkey = jax.random.split(key)
    params = init_params(pkey, input_size, hidden_size, output_size)

    # --- test 1: default (bf16 MXU operands), ragged small terms ------------
    sizes_a = [8, 24]
    terms_a = []
    for m in sizes_a:
        key, xk = jax.random.split(key)
        terms_a.append(jax.random.normal(xk, (input_size, m), jnp.float32))

    eff_a = relational_model_forward(terms_a, params)         # bf16 dots
    eff_a = [jax.block_until_ready(e) for e in eff_a]
    ref_a = _reference_forward(terms_a, params)
    for e, r, m in zip(eff_a, ref_a, sizes_a):
        assert e.shape == (m, output_size)
        assert jnp.allclose(e, r, atol=2e-2, rtol=2e-2), "bf16 path mismatch"

    # --- test 2: f32 path, multi-tile grid (ragged M, tile_m=128) ------------
    sizes_b = [100, 200]
    terms_b = []
    for m in sizes_b:
        key, xk = jax.random.split(key)
        terms_b.append(jax.random.normal(xk, (input_size, m), jnp.float32))

    eff_b = relational_model_forward(terms_b, params,
                                     tile_m=128, compute_dtype=jnp.float32)
    eff_b = [jax.block_until_ready(e) for e in eff_b]
    ref_b = _reference_forward(terms_b, params)
    for e, r, m in zip(eff_b, ref_b, sizes_b):
        assert e.shape == (m, output_size)
        assert jnp.allclose(e, r, atol=2e-3, rtol=2e-3), "f32 path mismatch"

    print("KERNEL_OK")
</pallas_src>

<mosaic_0001>
module attributes {stable_mosaic.version = 11 : i64} {
  func.func @_mlp_kernel(%arg0: i32, %arg1: memref<6x128xbf16, #tpu.memory_space<vmem>>, %arg2: memref<32x6xbf16, #tpu.memory_space<vmem>>, %arg3: memref<32x1xf32, #tpu.memory_space<vmem>>, %arg4: memref<32x32xbf16, #tpu.memory_space<vmem>>, %arg5: memref<32x1xf32, #tpu.memory_space<vmem>>, %arg6: memref<32x32xbf16, #tpu.memory_space<vmem>>, %arg7: memref<32x1xf32, #tpu.memory_space<vmem>>, %arg8: memref<3x32xbf16, #tpu.memory_space<vmem>>, %arg9: memref<3x1xf32, #tpu.memory_space<vmem>>, %arg10: memref<3x128xf32, #tpu.memory_space<vmem>>) attributes {dimension_semantics = [#tpu.dimension_semantics<parallel>], iteration_bounds = array<i64: 1>, scalar_prefetch = 0 : i64, scratch_operands = 0 : i64, tpu.core_type = #tpu.core_type<tc>, window_params = [{transform_indices = @transform_0, window_bounds = array<i64: 6, 128>}, {pipeline_mode = #tpu.pipeline_mode<synchronous>, transform_indices = @transform_1, window_bounds = array<i64: 32, 6>}, {pipeline_mode = #tpu.pipeline_mode<synchronous>, transform_indices = @transform_2, window_bounds = array<i64: 32, 1>}, {pipeline_mode = #tpu.pipeline_mode<synchronous>, transform_indices = @transform_3, window_bounds = array<i64: 32, 32>}, {pipeline_mode = #tpu.pipeline_mode<synchronous>, transform_indices = @transform_4, window_bounds = array<i64: 32, 1>}, {pipeline_mode = #tpu.pipeline_mode<synchronous>, transform_indices = @transform_5, window_bounds = array<i64: 32, 32>}, {pipeline_mode = #tpu.pipeline_mode<synchronous>, transform_indices = @transform_6, window_bounds = array<i64: 32, 1>}, {pipeline_mode = #tpu.pipeline_mode<synchronous>, transform_indices = @transform_7, window_bounds = array<i64: 3, 32>}, {pipeline_mode = #tpu.pipeline_mode<synchronous>, transform_indices = @transform_8, window_bounds = array<i64: 3, 1>}, {transform_indices = @transform_9, window_bounds = array<i64: 3, 128>}]} {
    %c0 = arith.constant 0 : index
    %c0_0 = arith.constant 0 : index
    %0 = vector.load %arg1[%c0, %c0_0] : memref<6x128xbf16, #tpu.memory_space<vmem>>, vector<6x128xbf16>
    %c0_1 = arith.constant 0 : index
    %c0_2 = arith.constant 0 : index
    %1 = vector.load %arg2[%c0_1, %c0_2] : memref<32x6xbf16, #tpu.memory_space<vmem>>, vector<32x6xbf16>
    %cst = arith.constant dense<0.000000e+00> : vector<32x128xf32>
    %2 = tpu.matmul %1, %0, %cst {dimension_numbers = #tpu.dot_dimension_numbers<[1], [0], [0], [1], [0, 0, 1, 1], [], []>} : vector<32x6xbf16>, vector<6x128xbf16>, vector<32x128xf32> -> vector<32x128xf32>
    %c0_3 = arith.constant 0 : index
    %c0_4 = arith.constant 0 : index
    %3 = vector.load %arg3[%c0_3, %c0_4] : memref<32x1xf32, #tpu.memory_space<vmem>>, vector<32x1xf32>
    %4 = vector.broadcast %3 : vector<32x1xf32> to vector<32x128xf32>
    %5 = arith.addf %2, %4 : vector<32x128xf32>
    %cst_5 = arith.constant 0.000000e+00 : f32
    %6 = vector.broadcast %cst_5 : f32 to vector<32x128xf32>
    %7 = arith.maximumf %5, %6 : vector<32x128xf32>
    %c0_6 = arith.constant 0 : index
    %c0_7 = arith.constant 0 : index
    %8 = vector.load %arg4[%c0_6, %c0_7] : memref<32x32xbf16, #tpu.memory_space<vmem>>, vector<32x32xbf16>
    %9 = arith.truncf %7 : vector<32x128xf32> to vector<32x128xbf16>
    %cst_8 = arith.constant dense<0.000000e+00> : vector<32x128xf32>
    %10 = tpu.matmul %8, %9, %cst_8 {dimension_numbers = #tpu.dot_dimension_numbers<[1], [0], [0], [1], [0, 0, 1, 1], [], []>} : vector<32x32xbf16>, vector<32x128xbf16>, vector<32x128xf32> -> vector<32x128xf32>
    %c0_9 = arith.constant 0 : index
    %c0_10 = arith.constant 0 : index
    %11 = vector.load %arg5[%c0_9, %c0_10] : memref<32x1xf32, #tpu.memory_space<vmem>>, vector<32x1xf32>
    %12 = vector.broadcast %11 : vector<32x1xf32> to vector<32x128xf32>
    %13 = arith.addf %10, %12 : vector<32x128xf32>
    %cst_11 = arith.constant 0.000000e+00 : f32
    %14 = vector.broadcast %cst_11 : f32 to vector<32x128xf32>
    %15 = arith.maximumf %13, %14 : vector<32x128xf32>
    %c0_12 = arith.constant 0 : index
    %c0_13 = arith.constant 0 : index
    %16 = vector.load %arg6[%c0_12, %c0_13] : memref<32x32xbf16, #tpu.memory_space<vmem>>, vector<32x32xbf16>
    %17 = arith.truncf %15 : vector<32x128xf32> to vector<32x128xbf16>
    %cst_14 = arith.constant dense<0.000000e+00> : vector<32x128xf32>
    %18 = tpu.matmul %16, %17, %cst_14 {dimension_numbers = #tpu.dot_dimension_numbers<[1], [0], [0], [1], [0, 0, 1, 1], [], []>} : vector<32x32xbf16>, vector<32x128xbf16>, vector<32x128xf32> -> vector<32x128xf32>
    %c0_15 = arith.constant 0 : index
    %c0_16 = arith.constant 0 : index
    %19 = vector.load %arg7[%c0_15, %c0_16] : memref<32x1xf32, #tpu.memory_space<vmem>>, vector<32x1xf32>
    %20 = vector.broadcast %19 : vector<32x1xf32> to vector<32x128xf32>
    %21 = arith.addf %18, %20 : vector<32x128xf32>
    %cst_17 = arith.constant 0.000000e+00 : f32
    %22 = vector.broadcast %cst_17 : f32 to vector<32x128xf32>
    %23 = arith.maximumf %21, %22 : vector<32x128xf32>
    %c0_18 = arith.constant 0 : index
    %c0_19 = arith.constant 0 : index
    %24 = vector.load %arg8[%c0_18, %c0_19] : memref<3x32xbf16, #tpu.memory_space<vmem>>, vector<3x32xbf16>
    %25 = arith.truncf %23 : vector<32x128xf32> to vector<32x128xbf16>
    %cst_20 = arith.constant dense<0.000000e+00> : vector<3x128xf32>
    %26 = tpu.matmul %24, %25, %cst_20 {dimension_numbers = #tpu.dot_dimension_numbers<[1], [0], [0], [1], [0, 0, 1, 1], [], []>} : vector<3x32xbf16>, vector<32x128xbf16>, vector<3x128xf32> -> vector<3x128xf32>
    %c0_21 = arith.constant 0 : index
    %c0_22 = arith.constant 0 : index
    %27 = vector.load %arg9[%c0_21, %c0_22] : memref<3x1xf32, #tpu.memory_space<vmem>>, vector<3x1xf32>
    %28 = vector.broadcast %27 : vector<3x1xf32> to vector<3x128xf32>
    %29 = arith.addf %26, %28 : vector<3x128xf32>
    %cst_23 = arith.constant 0.000000e+00 : f32
    %30 = vector.broadcast %cst_23 : f32 to vector<3x128xf32>
    %31 = arith.subf %30, %29 : vector<3x128xf32>
    %32 = math.exp %31 : vector<3x128xf32>
    %cst_24 = arith.constant 1.000000e+00 : f32
    %33 = vector.broadcast %cst_24 : f32 to vector<3x128xf32>
    %34 = arith.addf %33, %32 : vector<3x128xf32>
    %35 = tpu.reciprocal %34 {approx = true} : vector<3x128xf32> -> vector<3x128xf32>
    %c0_25 = arith.constant 0 : index
    %c0_26 = arith.constant 0 : index
    %36 = vector.load %arg10[%c0_25, %c0_26] : memref<3x128xf32, #tpu.memory_space<vmem>>, vector<3x128xf32>
    tpu.vector_store %arg10[%c0_25, %c0_26], %35 {strides = array<i32>} : memref<3x128xf32, #tpu.memory_space<vmem>>, vector<3x128xf32>,
    return
  }
  func.func @transform_0(%arg0: i32) -> (i32, i32) {
    %c0_i32 = arith.constant 0 : i32
    %c0_i32_0 = arith.constant 0 : i32
    return %c0_i32, %arg0 : i32, i32
  }
  func.func @transform_1(%arg0: i32) -> (i32, i32) {
    %c0_i32 = arith.constant 0 : i32
    %c0_i32_0 = arith.constant 0 : i32
    %c0_i32_1 = arith.constant 0 : i32
    return %c0_i32, %c0_i32_0 : i32, i32
  }
  func.func @transform_2(%arg0: i32) -> (i32, i32) {
    %c0_i32 = arith.constant 0 : i32
    %c0_i32_0 = arith.constant 0 : i32
    %c0_i32_1 = arith.constant 0 : i32
    return %c0_i32, %c0_i32_0 : i32, i32
  }
  func.func @transform_3(%arg0: i32) -> (i32, i32) {
    %c0_i32 = arith.constant 0 : i32
    %c0_i32_0 = arith.constant 0 : i32
    %c0_i32_1 = arith.constant 0 : i32
    return %c0_i32, %c0_i32_0 : i32, i32
  }
  func.func @transform_4(%arg0: i32) -> (i32, i32) {
    %c0_i32 = arith.constant 0 : i32
    %c0_i32_0 = arith.constant 0 : i32
    %c0_i32_1 = arith.constant 0 : i32
    return %c0_i32, %c0_i32_0 : i32, i32
  }
  func.func @transform_5(%arg0: i32) -> (i32, i32) {
    %c0_i32 = arith.constant 0 : i32
    %c0_i32_0 = arith.constant 0 : i32
    %c0_i32_1 = arith.constant 0 : i32
    return %c0_i32, %c0_i32_0 : i32, i32
  }
  func.func @transform_6(%arg0: i32) -> (i32, i32) {
    %c0_i32 = arith.constant 0 : i32
    %c0_i32_0 = arith.constant 0 : i32
    %c0_i32_1 = arith.constant 0 : i32
    return %c0_i32, %c0_i32_0 : i32, i32
  }
  func.func @transform_7(%arg0: i32) -> (i32, i32) {
    %c0_i32 = arith.constant 0 : i32
    %c0_i32_0 = arith.constant 0 : i32
    %c0_i32_1 = arith.constant 0 : i32
    return %c0_i32, %c0_i32_0 : i32, i32
  }
  func.func @transform_8(%arg0: i32) -> (i32, i32) {
    %c0_i32 = arith.constant 0 : i32
    %c0_i32_0 = arith.constant 0 : i32
    %c0_i32_1 = arith.constant 0 : i32
    return %c0_i32, %c0_i32_0 : i32, i32
  }
  func.func @transform_9(%arg0: i32) -> (i32, i32) {
    %c0_i32 = arith.constant 0 : i32
    %c0_i32_0 = arith.constant 0 : i32
    return %c0_i32, %arg0 : i32, i32
  }
}

</mosaic_0001>

<bundles_post_ra>
// kernel: tpu_custom_call.1
= control target key start
LH: loop header
LB: loop body
LE: loop exit
PB: predicated region body
PF: predicated region fallthrough
CT: control target
= control target key end

     0   :  { %vm80_vm0 = vcmask 1042432   ;;  %vm73_vm1 = vcmask 48128   ;;  %v504_v5 = vmov 0   ;;  %s629_s0 = inlined_call_operand.vmem [shape: bf16[6,128], index: 0, kind: input, shape index: {}]   ;;  %s630_s1 = inlined_call_operand.vmem [shape: bf16[32,6], index: 1, kind: input, shape index: {}]   ;;  %s631_s2 = inlined_call_operand.vmem [shape: f32[32,1], index: 2, kind: input, shape index: {}]   ;;  %s632_s3 = inlined_call_operand.vmem [shape: bf16[32,32], index: 3, kind: input, shape index: {}]   ;;  %s633_s4 = inlined_call_operand.vmem [shape: f32[32,1], index: 4, kind: input, shape index: {}]   ;;  %s634_s5 = inlined_call_operand.vmem [shape: bf16[32,32], index: 5, kind: input, shape index: {}]   ;;  %s635_s6 = inlined_call_operand.vmem [shape: f32[32,1], index: 6, kind: input, shape index: {}]   ;;  %s636_s7 = inlined_call_operand.vmem [shape: bf16[3,32], index: 7, kind: input, shape index: {}]   ;;  %s637_s8 = inlined_call_operand.vmem [shape: f32[3,1], index: 8, kind: input, shape index: {}]   ;;  %s638_s9 = inlined_call_operand.hbm [shape: f32[3,128], index: 9, kind: output, shape index: {}]  }
   0x1   :  { %v34_v0 = vld [vmem:[%s629_s0] sm:$0x7]  ;;  %v473_v3 = vld [vmem:[%s630_s1 + $0x8] sm:$0xff]   ;;  %v41_v4 = vld [vmem:[%s631_s2 + $0x10] sm:$0xff]  ;;  %470 = vset.pattern.permute.xlu0 %v504_v5  ;;  %471 = vset.pattern.permute.xlu1 %v504_v5 }
   0x2   :  { %v472_v1 = vld [vmem:[%s630_s1] sm:$0xff]   ;;  %465 = vmatprep.subr.msk.bf16.mxu0 %vm80_vm0, %v34_v0  ;;  %v82_v2 = vsel %vm80_vm0, %v34_v0, 0  ;;  %55 = vperm.xlu0 %470, %v41_v4   ;;  %v42_v7 = vld [vmem:[%s631_s2 + $0x18] sm:$0xff]  ;;  %v40_v8 = vld [vmem:[%s631_s2 + $0x8] sm:$0xff] }
   0x3   :  { %436 = vmatpush3.bf16.msra.mxu0 %v82_v2  ;;  %437 = vmatprep.mubr.msk.bf16.mxu0 %vm73_vm1, %v472_v1  ;;  %v39_v6 = vld [vmem:[%s631_s2] sm:$0xff]  ;;  %v145_v9 = vld [vmem:[%s633_s4 + $0x10] sm:$0xff]  ;;  %v146_v10 = vld [vmem:[%s633_s4 + $0x18] sm:$0xff] }
   0x4   :  { %45 = vperm.xlu1 %471, %v39_v6  }
   0x6   :  { %438 = vmatmul.mubr.msk.bf16.vlgmr.msra.gmra.mxu0 %vm73_vm1, %v473_v3  ;;  %60 = vperm.xlu0 %470, %v42_v7  }
   0x8   :  { %50 = vperm.xlu1 %471, %v40_v8  }
   0x9   :  { %14 = vsyncpa [#allocation3], 0  ;;  %v143_v11 = vld [vmem:[%s633_s4] sm:$0xff]  ;;  %v144_v12 = vld [vmem:[%s633_s4 + $0x8] sm:$0xff]  ;;  %vm177_vm2 = vcmask 261120   ;;  %v505_v58 = vmov 0.0  }
   0xa   :  { %159 = vperm.xlu0 %470, %v145_v9   ;;  %v245_v13 = vld [vmem:[%s635_s6 + $0x10] sm:$0xff]  ;;  %v246_v14 = vld [vmem:[%s635_s6 + $0x18] sm:$0xff]  ;;  %v243_v15 = vld [vmem:[%s635_s6] sm:$0xff]  ;;  %vm506_vm3 = vmmov 0   ;;  %s507_s1 = smov [#allocation2]  }
   0xb   :  { %v244_v16 = vld [vmem:[%s635_s6 + $0x8] sm:$0xff]  ;;  %v339_v17 = vld [vmem:[%s637_s8] sm:$0x7]  ;;  %s400_s21 = sshll.u32 %s507_s1, 4  ;;  %s401_s21 = int_to_ptr.vmem [resolvable:$true] %s400_s21 }
   0xc   :  { %164 = vperm.xlu1 %471, %v146_v10   ;;  %v474_v18 = vld [vmem:[%s632_s3] sm:$0xff]   ;;  %v475_v37 = vld [vmem:[%s632_s3 + $0x8] sm:$0xff]   ;;  %p487_p1 = scmp.lt.s32.totalorder %s401_s21, %s401_s21 }
   0xd   :  { %445 = vmatprep.mubr.msk.bf16.mxu1 %vm177_vm2, %v474_v18  ;;  %v476_v38 = vld [vmem:[%s634_s5] sm:$0xff]   ;;  %v477_v57 = vld [vmem:[%s634_s5 + $0x8] sm:$0xff]  }
   0xe   :  { %149 = vperm.xlu0 %470, %v143_v11   ;;  %453 = vmatprep.mubr.msk.bf16.mxu0 %vm177_vm2, %v476_v38 }
  0x10   :  { %154 = vperm.xlu1 %471, %v144_v12  }
  0x12   :  { %259 = vperm.xlu0 %470, %v245_v13   ;;  %v336_v13 = vld [vmem:[%s636_s7] sm:$0x3]  ;;  %s482_s7 = scalar_lea.vmem %s401_s21, 64 }
  0x13   :  { %p483_p0 = scmp.ne.s32.totalorder %s401_s21, %s482_s7  ;;  %p488_p2 = scmp.lt.s32.totalorder %s482_s7, %s482_s7 }
  0x14   :  { %264 = vperm.xlu1 %471, %v246_v14  }
  0x15   :  { %p489_p3 = por %p488_p2, %p487_p1 }
  0x16   :  { %249 = vperm.xlu0 %470, %v243_v15  }
  0x17   :  { %p490_p4 = pnand %p489_p3, %p483_p0 }
  0x18   :  { %254 = vperm.xlu1 %471, %v244_v16  }
  0x1a   :  { %342 = vperm.xlu0 %470, %v339_v17  }
  0x7d   :  { %v56_v19 = vpop.permute.xlu0 %55 }
  0x7f   :  { %v46_v20 = vpop.permute.xlu1 %45 }
  0x81   :  { %v61_v24 = vpop.permute.xlu0 %60 }
  0x83   :  { %v51_v28 = vpop.permute.xlu1 %50 }
  0x85   :  { %v160_v39 = vpop.permute.xlu0 %159 }
  0x87   :  { %v165_v40 = vpop.permute.xlu1 %164 }
  0x89   :  { %v150_v44 = vpop.permute.xlu0 %149 }
  0x8b   :  { %v155_v48 = vpop.permute.xlu1 %154 }
  0x8d   :  { %v260_v59 = vpop.permute.xlu0 %259 }
  0x8f   :  { %v265_v60 = vpop.permute.xlu1 %264 }
  0x91   :  { %v250_v1 = vpop.permute.xlu0 %249 }
  0x93   :  { %v255_v3 = vpop.permute.xlu1 %254 }
  0x95   :  { %v343_v14 = vpop.permute.xlu0 %342 }
  0xc6   :  { %v439_v21 = vpop.f32.mrf.mxu0 }
  0xc7   :  { %v127_v23 = vadd.f32 %v439_v21, %v56_v19 }
  0xc8   :  { %v118_v22 = vpop.f32.mrf.mxu0 }
  0xc9   :  { %v119_v26 = vadd.f32 %v118_v22, %v46_v20  ;;  %v135_v30 = vmax.f32 %v127_v23, 0.0 }
  0xca   :  { %v440_v25 = vpop.f32.mrf.mxu0 }
  0xcb   :  { %v130_v27 = vadd.f32 %v440_v25, %v61_v24  ;;  %v133_v33 = vmax.f32 %v119_v26, 0.0 }
  0xcc   :  { %v121_v29 = vpop.f32.mrf.mxu0 }
  0xcd   :  { %v136_v31 = vmax.f32 %v130_v27, 0.0  ;;  %v122_v32 = vadd.f32 %v121_v29, %v51_v28 }
  0xcf   :  { %v134_v34 = vmax.f32 %v122_v32, 0.0  ;;  %v142_v35 = vpack.c.bf16 %v136_v31, %v135_v30 }
  0xd1   :  { %v141_v36 = vpack.c.bf16 %v134_v34, %v133_v33  ;;  %441 = vmatprep.subr.bf16.mxu1 %v142_v35 }
  0xd2   :  { %442 = vmatpush3.bf16.msra.mxu1 %v142_v35 }
  0xd3   :  { %443 = vmatprep.subr.bf16.mxu1 %v141_v36 }
  0xd6   :  { %444 = vmatpush3.bf16.msra.mxu1 %v141_v36 }
  0xd7   :  { %457 = vmatprep.subr.bf16.mxu1 %v505_v58 }
  0xd9   :  { %446 = vmatmul.mubr.msk.bf16.vlgmr.msra.gmra.mxu1 %vm177_vm2, %v475_v37 }
  0xda   :  { %461 = vmatprep.mubr.msk.bf16.mxu1 %vm506_vm3, %v505_v58 }
 0x199   :  { %v447_v41 = vpop.f32.mrf.mxu1 }
 0x19a   :  { %v227_v43 = vadd.f32 %v447_v41, %v160_v39 }
 0x19b   :  { %v218_v42 = vpop.f32.mrf.mxu1 }
 0x19c   :  { %v219_v46 = vadd.f32 %v218_v42, %v150_v44  ;;  %v235_v50 = vmax.f32 %v227_v43, 0.0 }
 0x19d   :  { %v448_v45 = vpop.f32.mrf.mxu1 }
 0x19e   :  { %v230_v47 = vadd.f32 %v448_v45, %v165_v40  ;;  %v233_v53 = vmax.f32 %v219_v46, 0.0 }
 0x19f   :  { %v221_v49 = vpop.f32.mrf.mxu1 }
 0x1a0   :  { %v236_v51 = vmax.f32 %v230_v47, 0.0  ;;  %v222_v52 = vadd.f32 %v221_v49, %v155_v48 }
 0x1a2   :  { %v242_v54 = vpack.c.bf16 %v236_v51, %v235_v50  ;;  %v234_v55 = vmax.f32 %v222_v52, 0.0 }
 0x1a4   :  { %v241_v56 = vpack.c.bf16 %v234_v55, %v233_v53  ;;  %449 = vmatprep.subr.bf16.mxu0 %v242_v54 }
 0x1a5   :  { %450 = vmatpush3.bf16.msra.mxu0 %v242_v54 }
 0x1a6   :  { %451 = vmatprep.subr.bf16.mxu0 %v241_v56 }
 0x1a9   :  { %452 = vmatpush3.bf16.msra.mxu0 %v241_v56 }
 0x1ac   :  { %454 = vmatmul.mubr.msk.bf16.vlgmr.msra.gmra.mxu0 %vm177_vm2, %v477_v57 }
 0x26c   :  { %v455_v61 = vpop.f32.mrf.mxu0 }
 0x26d   :  { %v326_v63 = vadd.f32 %v455_v61, %v260_v59 }
 0x26e   :  { %v317_v62 = vpop.f32.mrf.mxu0 }
 0x26f   :  { %v334_v5 = vmax.f32 %v326_v63, 0.0  ;;  %v318_v6 = vadd.f32 %v317_v62, %v250_v1 }
 0x270   :  { %v456_v0 = vpop.f32.mrf.mxu0 }
 0x271   :  { %v329_v2 = vadd.f32 %v456_v0, %v265_v60  ;;  %v332_v11 = vmax.f32 %v318_v6, 0.0 }
 0x272   :  { %v320_v4 = vpop.f32.mrf.mxu0 }
 0x273   :  { %v335_v7 = vmax.f32 %v329_v2, 0.0  ;;  %v321_v8 = vadd.f32 %v320_v4, %v255_v3 }
 0x275   :  { %v338_v9 = vpack.c.bf16 %v335_v7, %v334_v5  ;;  %v333_v10 = vmax.f32 %v321_v8, 0.0 }
 0x277   :  { %458 = vmatpush3.bf16.msra.mxu1 %v338_v9  ;;  %v337_v12 = vpack.c.bf16 %v333_v10, %v332_v11 }
 0x278   :  { %459 = vmatprep.subr.bf16.mxu1 %v505_v58 }
 0x27b   :  { %460 = vmatpush3.bf16.msra.mxu1 %v337_v12 }
 0x27e   :  { %462 = vmatmul.mubr.msk.bf16.vlgmr.msra.gmra.mxu1 %vm177_vm2, %v336_v13 }
 0x33e   :  { %v382_v15 = vpop.f32.mrf.mxu1 }
 0x33f   :  { %v383_v16 = vadd.f32 %v382_v15, %v343_v14 }
 0x340   :  { %v463_v17 = vpop.f32.mrf.mxu1 }
 0x341   :  { %v388_v18 = vsub.f32 0.0, %v383_v16 }
 0x342   :  { %v385_v19 = vpop.f32.mrf.mxu1 }
 0x343   :  { %v389_v20 = vmul.f32 1.442695, %v388_v18 }
 0x344   :  { %v464_v21 = vpop.f32.mrf.mxu1 }
 0x345   :  { %478 = vpow2.f32 %v389_v20 }
 0x352   :  { %v479_v22 = vpop.eup %478 }
 0x353   :  { %v391_v23 = vadd.f32 1.0, %v479_v22 }
 0x355   :  { %480 = vrcp.f32 %v391_v23 }
 0x362   :  { %v481_v24 = vpop.eup %480 }
 0x363   :  { %393 = vst [vmem:[#allocation2] sm:$0x7] %v481_v24 }
 0x364   :  { %493 = shalt.err (!%p490_p4)
}
 0x365   :  { %403 = dma.vmem_to_hbm [thread:$0]  %s401_s21, 64, %s638_s9, [#allocation3]  }
 0x366   :  { %502 = dma.done.wait [#allocation3], 64  }
 0x367   :  { %503 = vsyncadd [#allocation3], 4294967232 }
 0x368   :  { %407 = vsyncpa [#allocation3], 1 }

</bundles_post_ra>
